<compile_context>
chip_gen: v7x
topology: tpu7x:2x2x1
jax: 0.10.0
libtpu: 0.0.40
codegen_flags: <defaults>
</compile_context>

<pallas_src>
import functools

import jax
import jax.numpy as jnp
from jax import lax
from jax.experimental import pallas as pl
from jax.experimental.pallas import tpu as pltpu


_LANE = 128


def _round_up(x, m):
    return ((x + m - 1) // m) * m


def _vmem_capacity_bytes():
    """Best-effort per-core VMEM capacity; conservative 64 MiB (v7x) fallback."""
    try:
        info = pltpu.get_tpu_info()
        for attr in ("vmem_capacity_bytes", "vmem_bytes"):
            cap = getattr(info, attr, None)
            if cap:
                return int(cap)
    except Exception:
        pass
    return 64 << 20


def _to_features_2d(x_nchw):
    """torch: view(B*H, W*C) on a contiguous NCHW tensor == row-major reshape.

    No dtype cast here (bf16 cast happens in-kernel).  Pads M and K up to
    multiples of 128 only when needed; zero rows/cols are contraction-neutral
    and cancel in the MSE (target is built with the same padding).
    Returns (features (Mp, Kp), real M, real K, gram scale).
    """
    b, c, h, w = x_nchw.shape
    m, k = b * h, w * c
    feats = jnp.reshape(x_nchw, (m, k))          # pure layout glue, no copy
    mp = _round_up(m, _LANE)                     # lane-dense Gram / accumulator
    kp = _round_up(k, _LANE)
    if (mp, kp) != (m, k):
        feats = jnp.pad(feats, ((0, mp - m), (0, kp - k)))
    return feats, m, k, 1.0 / float(b * c * h * w)


def _plan(mp, kp, feat_itemsize, resident_f32_tiles):
    """Pick tk (multiple of 128), grid size and a vmem limit for this chip."""
    cap = _vmem_capacity_bytes()
    resident = resident_f32_tiles * mp * mp * 4      # accumulator (+ target / out bufs)
    headroom = 6 << 20
    budget = max(4 << 20, cap - resident - headroom)  # for double-buffered (mp, tk) blocks
    max_tk = max(_LANE, (budget // (2 * mp * feat_itemsize)) // _LANE * _LANE)
    tk = int(min(kp, max_tk))
    nk = -(-kp // tk)                                 # cdiv; last block masked in-kernel
    need = resident + 2 * mp * tk * feat_itemsize + (2 << 20)
    if need > cap:
        raise ValueError(
            f"StyleLoss Pallas plan needs ~{need >> 20} MiB VMEM but this chip has "
            f"{cap >> 20} MiB; (tm, tn) Gram output tiling for very large M is not "
            f"implemented (see TODO).")
    vmem_limit = int(min(cap, max(need, 16 << 20)))
    return tk, int(nk), vmem_limit


# ----------------------------------------------------------------------------
# Kernel 1: Gram matrix (used once at init to build the target gram)
#   g = (features @ features.T) * scale,  K-tiled with a resident f32 accumulator.
# ----------------------------------------------------------------------------
def _gram_kernel(feats_ref, gram_ref, acc_ref, *, scale, tk, kp, mask_last,
                 compute_dtype):
    k = pl.program_id(0)

    @pl.when(k == 0)
    def _():
        acc_ref[...] = jnp.zeros_like(acc_ref)

    f = feats_ref[...]                      # (Mp, tk) in the HBM dtype (e.g. f32)
    if mask_last:                           # zero the OOB columns of the last cdiv block
        col = k * tk + lax.broadcasted_iota(jnp.int32, f.shape, 1)
        f = jnp.where(col < kp, f, jnp.zeros_like(f))
    f = f.astype(compute_dtype)             # in-kernel cast: rides the VPU slot
    acc_ref[...] += lax.dot_general(
        f, f,
        dimension_numbers=(((1,), (1,)), ((), ())),   # A · Aᵀ without a transpose
        preferred_element_type=jnp.float32,
    )

    @pl.when(k == pl.num_programs(0) - 1)
    def _():
        gram_ref[...] = acc_ref[...] * scale


def gram_matrix_pallas(feats_padded, gram_scale, *, compute_dtype=jnp.bfloat16):
    mp, kp = feats_padded.shape
    itemsize = jnp.dtype(feats_padded.dtype).itemsize
    # resident: f32 accumulator + double-buffered (Mp, Mp) f32 output
    tk, nk, vmem_limit = _plan(mp, kp, itemsize, resident_f32_tiles=3)
    kernel = functools.partial(
        _gram_kernel, scale=gram_scale, tk=tk, kp=kp,
        mask_last=(kp % tk) != 0, compute_dtype=compute_dtype)
    return pl.pallas_call(
        kernel,
        out_shape=jax.ShapeDtypeStruct((mp, mp), jnp.float32),
        grid_spec=pltpu.PrefetchScalarGridSpec(
            num_scalar_prefetch=0,
            grid=(nk,),
            in_specs=[pl.BlockSpec((mp, tk), lambda k: (0, k))],
            out_specs=pl.BlockSpec((mp, mp), lambda k: (0, 0)),
            scratch_shapes=[pltpu.VMEM((mp, mp), jnp.float32)],
        ),
        compiler_params=pltpu.CompilerParams(
            dimension_semantics=("arbitrary",),
            vmem_limit_bytes=vmem_limit,
        ),
    )(feats_padded)


# ----------------------------------------------------------------------------
# Kernel 2: Gram + MSE against a precomputed (padded) target gram.
# Only the scalar loss is emitted; the gram stays in VMEM scratch.  The target
# is constant across the grid, so it is DMA'd once into a single VMEM buffer
# (no pipeline double-buffering), overlapping the K reduction.
# ----------------------------------------------------------------------------
def _style_loss_kernel(feats_ref, target_hbm_ref, loss_ref,
                       acc_ref, tgt_ref, tgt_sem, *,
                       gram_scale, mse_scale, tk, kp, mask_last, compute_dtype):
    k = pl.program_id(0)

    @pl.when(k == 0)
    def _():
        acc_ref[...] = jnp.zeros_like(acc_ref)
        # Prefetch the constant target Gram once; overlaps with all K steps.
        pltpu.make_async_copy(target_hbm_ref, tgt_ref, tgt_sem).start()

    f = feats_ref[...]
    if mask_last:
        col = k * tk + lax.broadcasted_iota(jnp.int32, f.shape, 1)
        f = jnp.where(col < kp, f, jnp.zeros_like(f))
    f = f.astype(compute_dtype)
    acc_ref[...] += lax.dot_general(
        f, f,
        dimension_numbers=(((1,), (1,)), ((), ())),
        preferred_element_type=jnp.float32,
    )

    @pl.when(k == pl.num_programs(0) - 1)
    def _():
        pltpu.make_async_copy(target_hbm_ref, tgt_ref, tgt_sem).wait()
        diff = acc_ref[...] * gram_scale - tgt_ref[...]
        loss_ref[0, 0] = jnp.sum(diff * diff) * mse_scale


def style_loss_pallas(feats_padded, target_gram_padded, gram_scale, mse_scale,
                      *, compute_dtype=jnp.bfloat16):
    mp, kp = feats_padded.shape
    assert target_gram_padded.shape == (mp, mp)
    itemsize = jnp.dtype(feats_padded.dtype).itemsize
    # resident: f32 accumulator + single-buffered f32 target staging
    tk, nk, vmem_limit = _plan(mp, kp, itemsize, resident_f32_tiles=2)
    kernel = functools.partial(
        _style_loss_kernel, gram_scale=gram_scale, mse_scale=mse_scale,
        tk=tk, kp=kp, mask_last=(kp % tk) != 0, compute_dtype=compute_dtype)
    loss = pl.pallas_call(
        kernel,
        out_shape=jax.ShapeDtypeStruct((1, 1), jnp.float32),
        grid_spec=pltpu.PrefetchScalarGridSpec(
            num_scalar_prefetch=0,
            grid=(nk,),
            in_specs=[
                pl.BlockSpec((mp, tk), lambda k: (0, k)),
                pl.BlockSpec(memory_space=pl.ANY),   # constant target: manual single DMA
            ],
            out_specs=pl.BlockSpec((1, 1), lambda k: (0, 0), memory_space=pltpu.SMEM),
            scratch_shapes=[
                pltpu.VMEM((mp, mp), jnp.float32),   # gram accumulator
                pltpu.VMEM((mp, mp), jnp.float32),   # target staging (single buffer)
                pltpu.SemaphoreType.DMA,
            ],
        ),
        compiler_params=pltpu.CompilerParams(
            dimension_semantics=("arbitrary",),
            vmem_limit_bytes=vmem_limit,
        ),
    )(feats_padded, target_gram_padded)
    return loss[0, 0]


# ----------------------------------------------------------------------------
# StyleLoss module equivalent
# ----------------------------------------------------------------------------
class StyleLoss:
    def __init__(self, target_feature, compute_dtype=jnp.bfloat16):
        self._compute_dtype = compute_dtype
        feats, m, _k, gram_scale = _to_features_2d(target_feature)
        self._m = m
        self.target = gram_matrix_pallas(feats, gram_scale,
                                         compute_dtype=compute_dtype)  # (Mp, Mp) f32
        self.loss = jnp.float32(0.0)  # mse(target, target) == 0

    def forward(self, input1):
        feats, m, _k, gram_scale = _to_features_2d(input1)
        assert feats.shape[0] == self.target.shape[0], \
            "feature map shape mismatch vs. target"
        mse_scale = 1.0 / float(m * m)  # average over the real (unpadded) M x M gram
        self.loss = style_loss_pallas(feats, self.target, gram_scale, mse_scale,
                                      compute_dtype=self._compute_dtype)
        return input1  # StyleLoss passes the activation through unchanged


# ----------------------------------------------------------------------------
# References (plain JAX) for correctness checks
# ----------------------------------------------------------------------------
def _gram_ref_f32(x):
    b, c, h, w = x.shape
    f2 = jnp.reshape(x, (b * h, w * c)).astype(jnp.float32)
    return (f2 @ f2.T) / float(b * c * h * w)


def _gram_ref_bf16(x):
    # bf16-consistent reference (matches the kernel's compute dtype)
    b, c, h, w = x.shape
    f2 = jnp.reshape(x, (b * h, w * c)).astype(jnp.bfloat16)
    g = lax.dot_general(f2, f2, (((1,), (1,)), ((), ())),
                        preferred_element_type=jnp.float32)
    return g / float(b * c * h * w)


if __name__ == "__main__":
    key = jax.random.PRNGKey(0)
    k1, k2 = jax.random.split(key)

    # Small shapes consistent with the conv-feature-map input (NCHW).
    B, C, H, W = 2, 4, 16, 16
    target_feature = jax.random.normal(k1, (B, C, H, W), dtype=jnp.float32)
    x = jax.random.normal(k2, (B, C, H, W), dtype=jnp.float32)

    module = StyleLoss(target_feature)
    out = module.forward(x)

    out = jax.block_until_ready(out)
    loss = jax.block_until_ready(module.loss)

    M = B * H
    target_unpadded = module.target[:M, :M]

    # bf16-consistent reference (tight)
    t_ref16 = _gram_ref_bf16(target_feature)
    g_ref16 = _gram_ref_bf16(x)
    loss_ref16 = jnp.mean((g_ref16 - t_ref16) ** 2)

    # pure-f32 reference (loose: bf16 MXU inputs -> ~1e-2-level relative error)
    t_ref32 = _gram_ref_f32(target_feature)
    g_ref32 = _gram_ref_f32(x)
    loss_ref32 = jnp.mean((g_ref32 - t_ref32) ** 2)

    assert out.shape == x.shape and bool(jnp.all(out == x))
    assert jnp.allclose(target_unpadded, t_ref16, atol=1e-6, rtol=1e-2)
    assert jnp.allclose(loss, loss_ref16, atol=1e-7, rtol=1e-2)
    assert jnp.allclose(target_unpadded, t_ref32, atol=1e-4, rtol=5e-2)
    assert jnp.allclose(loss, loss_ref32, atol=1e-6, rtol=5e-2)

    print("KERNEL_OK")
</pallas_src>

<mosaic_0001>
module attributes {stable_mosaic.version = 11 : i64} {
  func.func @_gram_kernel(%arg0: i32, %arg1: memref<128x128xf32, #tpu.memory_space<vmem>>, %arg2: memref<128x128xf32, #tpu.memory_space<vmem>>, %arg3: memref<128x128xf32, #tpu.memory_space<vmem>>) attributes {dimension_semantics = [#tpu.dimension_semantics<arbitrary>], iteration_bounds = array<i64: 1>, scalar_prefetch = 0 : i64, scratch_operands = 1 : i64, tpu.core_type = #tpu.core_type<tc>, window_params = [{transform_indices = @transform_0, window_bounds = array<i64: 128, 128>}, {pipeline_mode = #tpu.pipeline_mode<synchronous>, transform_indices = @transform_1, window_bounds = array<i64: 128, 128>}]} {
    %c0_i32 = arith.constant 0 : i32
    %0 = arith.cmpi eq, %arg0, %c0_i32 : i32
    %1 = arith.extui %0 : i1 to i32
    %c0_i32_0 = arith.constant 0 : i32
    %2 = arith.cmpi ne, %1, %c0_i32_0 : i32
    scf.if %2 {
      %cst_8 = arith.constant 0.000000e+00 : f32
      %12 = vector.broadcast %cst_8 : f32 to vector<128x128xf32>
      %c0_9 = arith.constant 0 : index
      %c0_10 = arith.constant 0 : index
      %13 = vector.load %arg3[%c0_9, %c0_10] : memref<128x128xf32, #tpu.memory_space<vmem>>, vector<128x128xf32>
      tpu.vector_store %arg3[%c0_9, %c0_10], %12 {strides = array<i32>} : memref<128x128xf32, #tpu.memory_space<vmem>>, vector<128x128xf32>,
    } else {
    }
    %c0 = arith.constant 0 : index
    %c0_1 = arith.constant 0 : index
    %3 = vector.load %arg1[%c0, %c0_1] : memref<128x128xf32, #tpu.memory_space<vmem>>, vector<128x128xf32>
    %4 = arith.truncf %3 : vector<128x128xf32> to vector<128x128xbf16>
    %c0_2 = arith.constant 0 : index
    %c0_3 = arith.constant 0 : index
    %5 = vector.load %arg3[%c0_2, %c0_3] : memref<128x128xf32, #tpu.memory_space<vmem>>, vector<128x128xf32>
    %cst = arith.constant dense<0.000000e+00> : vector<128x128xf32>
    %6 = tpu.matmul %4, %4, %cst {dimension_numbers = #tpu.dot_dimension_numbers<[1], [1], [0], [0], [0, 0, 1, 0], [], []>} : vector<128x128xbf16>, vector<128x128xbf16>, vector<128x128xf32> -> vector<128x128xf32>
    %7 = arith.addf %5, %6 : vector<128x128xf32>
    %c0_4 = arith.constant 0 : index
    %c0_5 = arith.constant 0 : index
    %8 = vector.load %arg3[%c0_4, %c0_5] : memref<128x128xf32, #tpu.memory_space<vmem>>, vector<128x128xf32>
    tpu.vector_store %arg3[%c0_4, %c0_5], %7 {strides = array<i32>} : memref<128x128xf32, #tpu.memory_space<vmem>>, vector<128x128xf32>,
    %c0_i32_6 = arith.constant 0 : i32
    %9 = arith.cmpi eq, %arg0, %c0_i32_6 : i32
    %10 = arith.extui %9 : i1 to i32
    %c0_i32_7 = arith.constant 0 : i32
    %11 = arith.cmpi ne, %10, %c0_i32_7 : i32
    scf.if %11 {
      %c0_8 = arith.constant 0 : index
      %c0_9 = arith.constant 0 : index
      %12 = vector.load %arg3[%c0_8, %c0_9] : memref<128x128xf32, #tpu.memory_space<vmem>>, vector<128x128xf32>
      %cst_10 = arith.constant 4.8828125E-4 : f32
      %13 = vector.broadcast %cst_10 : f32 to vector<128x128xf32>
      %14 = arith.mulf %12, %13 : vector<128x128xf32>
      %c0_11 = arith.constant 0 : index
      %c0_12 = arith.constant 0 : index
      %15 = vector.load %arg2[%c0_11, %c0_12] : memref<128x128xf32, #tpu.memory_space<vmem>>, vector<128x128xf32>
      tpu.vector_store %arg2[%c0_11, %c0_12], %14 {strides = array<i32>} : memref<128x128xf32, #tpu.memory_space<vmem>>, vector<128x128xf32>,
    } else {
    }
    return
  }
  func.func @transform_0(%arg0: i32) -> (i32, i32) {
    %c0_i32 = arith.constant 0 : i32
    %c0_i32_0 = arith.constant 0 : i32
    return %c0_i32, %arg0 : i32, i32
  }
  func.func @transform_1(%arg0: i32) -> (i32, i32) {
    %c0_i32 = arith.constant 0 : i32
    %c0_i32_0 = arith.constant 0 : i32
    %c0_i32_1 = arith.constant 0 : i32
    return %c0_i32, %c0_i32_0 : i32, i32
  }
}

</mosaic_0001>

<bundles_post_ra>
// kernel: tpu_custom_call.1
= control target key start
LH: loop header
LB: loop body
LE: loop exit
PB: predicated region body
PF: predicated region fallthrough
CT: control target
= control target key end

     0   :  { %6 = vsyncpa [#allocation4], 0  ;;  %s441_s0 = inlined_call_operand.hbm [shape: f32[128,128], index: 0, kind: input, shape index: {}]   ;;  %s442_s1 = inlined_call_operand.hbm [shape: f32[128,128], index: 1, kind: output, shape index: {}]  }
   0x1   :  { %7 = vsyncpa [#allocation5], 0  ;;  %s397_s6 = smov [#allocation3]   ;;  %s349_s10 = scalar_lea.hbm %s441_s0, 2048 }
   0x2   :  { %s13_s7 = sshll.u32 %s397_s6, 4  ;;  %p350_p0 = scmp.ne.s32.totalorder %s441_s0, %s349_s10  ;;  %s14_s7 = int_to_ptr.vmem [resolvable:$true] %s13_s7 }
   0x3   :  { %p353_p1 = scmp.lt.u32.totalorder %s349_s10, %s441_s0 }
   0x5   :  { %p355_p2 = pnand %p353_p1, %p350_p0 }
   0x7   :  { %358 = shalt.err (!%p355_p2)
}
   0x8   :  { %s359_s15 = scalar_lea.vmem %s14_s7, 2048  ;;  %p364_p4 = scmp.lt.s32.totalorder %s14_s7, %s14_s7 }
   0x9   :  { %p360_p3 = scmp.ne.s32.totalorder %s14_s7, %s359_s15  ;;  %p365_p5 = scmp.lt.s32.totalorder %s359_s15, %s359_s15 }
   0xb   :  { %p366_p6 = por %p365_p5, %p364_p4 }
   0xd   :  { %p367_p7 = pnand %p366_p6, %p360_p3 }
   0xf   :  { %370 = shalt.err (!%p367_p7)
}
  0x10   :  { %s398_s16 = smov 128   ;;  %s399_s17 = smov 8  }
  0x11   :  { %19 = dma.hbm_to_vmem [thread:$0]  %s441_s0, 2048, %s14_s7, [#allocation4], %s398_s16, %s398_s16, %s399_s17  }
  0x12   :  { %393 = dma.done.wait [#allocation4], 2048  }
  0x13   :  { %394 = vsyncadd [#allocation4], 4294965248  ;;  %v44_v0 = vld [vmem:[#allocation3] sm:$0xff]  ;;  %v45_v1 = vld [vmem:[#allocation3 + $0x8] sm:$0xff]  ;;  %s400_s0 = smov [#allocation6]  }
  0x14   :  { %v46_v2 = vld [vmem:[#allocation3 + $0x10] sm:$0xff]  ;;  %v60_v3 = vpack.c.bf16 %v45_v1, %v44_v0  ;;  %v47_v4 = vld [vmem:[#allocation3 + $0x18] sm:$0xff]  ;;  %v52_v6 = vld [vmem:[#allocation3 + $0x40] sm:$0xff]  ;;  %s269_s20 = sshll.u32 %s400_s0, 4  ;;  %s270_s20 = int_to_ptr.vmem [resolvable:$true] %s269_s20 }
  0x15   :  { %v61_v5 = vpack.c.bf16 %v47_v4, %v46_v2  ;;  %v53_v7 = vld [vmem:[#allocation3 + $0x48] sm:$0xff]  ;;  %v48_v9 = vld [vmem:[#allocation3 + $0x20] sm:$0xff]  ;;  %v50_v12 = vld [vmem:[#allocation3 + $0x30] sm:$0xff]  ;;  %s371_s21 = scalar_lea.vmem %s270_s20, 2048  ;;  %p376_p9 = scmp.lt.s32.totalorder %s270_s20, %s270_s20 }
  0x16   :  { %297 = vmatprep.subr.bf16.mxu0 %v60_v3  ;;  %329 = vmatprep.subr.bf16.mxu1 %v60_v3  ;;  %v64_v8 = vpack.c.bf16 %v53_v7, %v52_v6  ;;  %v49_v10 = vld [vmem:[#allocation3 + $0x28] sm:$0xff]  ;;  %v51_v13 = vld [vmem:[#allocation3 + $0x38] sm:$0xff]  ;;  %v54_v15 = vld [vmem:[#allocation3 + $0x50] sm:$0xff]  ;;  %p372_p8 = scmp.ne.s32.totalorder %s270_s20, %s371_s21  ;;  %p377_p10 = scmp.lt.s32.totalorder %s371_s21, %s371_s21 }
  0x17   :  { %298 = vmatpush3.bf16.xpose.msra.mxu0 %v60_v3  ;;  %337 = vmatpush3.bf16.xpose.msra.mxu1 %v60_v3  ;;  %v62_v11 = vpack.c.bf16 %v49_v10, %v48_v9  ;;  %v63_v14 = vpack.c.bf16 %v51_v13, %v50_v12  ;;  %v55_v16 = vld [vmem:[#allocation3 + $0x58] sm:$0xff]  ;;  %v56_v18 = vld [vmem:[#allocation3 + $0x60] sm:$0xff]  ;;  %v57_v19 = vld [vmem:[#allocation3 + $0x68] sm:$0xff] }
  0x18   :  { %299 = vmatprep.subr.bf16.mxu0 %v61_v5  ;;  %330 = vmatprep.subr.bf16.mxu1 %v61_v5  ;;  %v65_v17 = vpack.c.bf16 %v55_v16, %v54_v15  ;;  %v66_v20 = vpack.c.bf16 %v57_v19, %v56_v18  ;;  %v58_v21 = vld [vmem:[#allocation3 + $0x70] sm:$0xff]  ;;  %v59_v22 = vld [vmem:[#allocation3 + $0x78] sm:$0xff]  ;;  %p378_p11 = por %p377_p10, %p376_p9 }
  0x19   :  { %313 = vmatprep.mubr.bf16.mxu0 %v60_v3  ;;  %321 = vmatprep.mubr.bf16.mxu1 %v64_v8  ;;  %v67_v23 = vpack.c.bf16 %v59_v22, %v58_v21 }
  0x1a   :  { %p379_p12 = pnand %p378_p11, %p372_p8 }
  0x1f   :  { %300 = vmatpush3.bf16.xpose.msra.mxu0 %v61_v5  ;;  %338 = vmatpush3.bf16.xpose.msra.mxu1 %v61_v5 }
  0x20   :  { %301 = vmatprep.subr.bf16.mxu0 %v62_v11  ;;  %331 = vmatprep.subr.bf16.mxu1 %v62_v11 }
  0x27   :  { %302 = vmatpush3.bf16.xpose.msra.mxu0 %v62_v11  ;;  %339 = vmatpush3.bf16.xpose.msra.mxu1 %v62_v11 }
  0x28   :  { %303 = vmatprep.subr.bf16.mxu0 %v63_v14  ;;  %332 = vmatprep.subr.bf16.mxu1 %v63_v14 }
  0x2f   :  { %304 = vmatpush3.bf16.xpose.msra.mxu0 %v63_v14  ;;  %340 = vmatpush3.bf16.xpose.msra.mxu1 %v63_v14 }
  0x30   :  { %305 = vmatprep.subr.bf16.mxu0 %v64_v8  ;;  %333 = vmatprep.subr.bf16.mxu1 %v64_v8 }
  0x37   :  { %306 = vmatpush3.bf16.xpose.msra.mxu0 %v64_v8  ;;  %341 = vmatpush3.bf16.xpose.msra.mxu1 %v64_v8 }
  0x38   :  { %307 = vmatprep.subr.bf16.mxu0 %v65_v17  ;;  %334 = vmatprep.subr.bf16.mxu1 %v65_v17 }
  0x3f   :  { %308 = vmatpush3.bf16.xpose.msra.mxu0 %v65_v17  ;;  %342 = vmatpush3.bf16.xpose.msra.mxu1 %v65_v17 }
  0x40   :  { %309 = vmatprep.subr.bf16.mxu0 %v66_v20  ;;  %335 = vmatprep.subr.bf16.mxu1 %v66_v20 }
  0x47   :  { %310 = vmatpush3.bf16.xpose.msra.mxu0 %v66_v20  ;;  %343 = vmatpush3.bf16.xpose.msra.mxu1 %v66_v20 }
  0x48   :  { %311 = vmatprep.subr.bf16.mxu0 %v67_v23  ;;  %336 = vmatprep.subr.bf16.mxu1 %v67_v23 }
  0x4f   :  { %312 = vmatpush3.bf16.xpose.msra.mxu0 %v67_v23  ;;  %344 = vmatpush3.bf16.xpose.msra.mxu1 %v67_v23 }
  0x56   :  { %314 = vmatmul.mubr.bf16.vlgmr.msra.gmra.mrb[0].mxu0 %v61_v5  ;;  %322 = vmatmul.mubr.bf16.vlgmr.msra.gmra.mrb[0].mxu1 %v65_v17 }
  0x57   :  { %317 = vmatprep.mubr.bf16.mxu0 %v62_v11  ;;  %325 = vmatprep.mubr.bf16.mxu1 %v66_v20 }
  0x5e   :  { %318 = vmatmul.mubr.bf16.gmra.mrb[4].mxu0 %v63_v14  ;;  %326 = vmatmul.mubr.bf16.gmra.mrb[4].mxu1 %v67_v23 }
 0x129   :  { %v315_v24 = vpop.f32.mrb[0].mxu0  ;;  %v323_v25 = vpop.f32.mrb[0].mxu1 }
 0x12a   :  { %v234_v26 = vmul.f32 0.00048828125, %v315_v24  ;;  %v242_v27 = vmul.f32 0.00048828125, %v323_v25  ;;  %v118_v28 = vpop.f32.mrb[1].mxu0  ;;  %v150_v29 = vpop.f32.mrb[1].mxu1 }
 0x12b   :  { %v232_v30 = vmul.f32 0.00048828125, %v118_v28  ;;  %v240_v31 = vmul.f32 0.00048828125, %v150_v29  ;;  %v316_v32 = vpop.f32.mrb[2].mxu0  ;;  %v324_v33 = vpop.f32.mrb[2].mxu1 }
 0x12c   :  { %250 = vst [vmem:[#allocation6 + $0x10] sm:$0xff] %v234_v26  ;;  %258 = vst [vmem:[#allocation6 + $0x50] sm:$0xff] %v242_v27  ;;  %v235_v34 = vmul.f32 0.00048828125, %v316_v32  ;;  %v243_v35 = vmul.f32 0.00048828125, %v324_v33  ;;  %v121_v36 = vpop.f32.mrb[3].mxu0  ;;  %v153_v37 = vpop.f32.mrb[3].mxu1 }
 0x12d   :  { %248 = vst [vmem:[#allocation6] sm:$0xff] %v232_v30  ;;  %256 = vst [vmem:[#allocation6 + $0x40] sm:$0xff] %v240_v31  ;;  %v233_v38 = vmul.f32 0.00048828125, %v121_v36  ;;  %v241_v39 = vmul.f32 0.00048828125, %v153_v37 }
 0x12e   :  { %251 = vst [vmem:[#allocation6 + $0x18] sm:$0xff] %v235_v34  ;;  %259 = vst [vmem:[#allocation6 + $0x58] sm:$0xff] %v243_v35 }
 0x12f   :  { %249 = vst [vmem:[#allocation6 + $0x8] sm:$0xff] %v233_v38  ;;  %257 = vst [vmem:[#allocation6 + $0x48] sm:$0xff] %v241_v39 }
 0x131   :  { %v319_v40 = vpop.f32.mrb[4].mxu0  ;;  %v327_v41 = vpop.f32.mrb[4].mxu1 }
 0x132   :  { %v238_v42 = vmul.f32 0.00048828125, %v319_v40  ;;  %v246_v43 = vmul.f32 0.00048828125, %v327_v41  ;;  %v134_v44 = vpop.f32.mrb[5].mxu0  ;;  %v166_v45 = vpop.f32.mrb[5].mxu1 }
 0x133   :  { %v236_v46 = vmul.f32 0.00048828125, %v134_v44  ;;  %v244_v47 = vmul.f32 0.00048828125, %v166_v45  ;;  %v320_v48 = vpop.f32.mrb[6].mxu0  ;;  %v328_v49 = vpop.f32.mrb[6].mxu1 }
 0x134   :  { %254 = vst [vmem:[#allocation6 + $0x30] sm:$0xff] %v238_v42  ;;  %262 = vst [vmem:[#allocation6 + $0x70] sm:$0xff] %v246_v43  ;;  %v239_v50 = vmul.f32 0.00048828125, %v320_v48  ;;  %v247_v51 = vmul.f32 0.00048828125, %v328_v49  ;;  %v137_v52 = vpop.f32.mrb[7].mxu0  ;;  %v169_v53 = vpop.f32.mrb[7].mxu1 }
 0x135   :  { %252 = vst [vmem:[#allocation6 + $0x20] sm:$0xff] %v236_v46  ;;  %260 = vst [vmem:[#allocation6 + $0x60] sm:$0xff] %v244_v47  ;;  %v237_v54 = vmul.f32 0.00048828125, %v137_v52  ;;  %v245_v55 = vmul.f32 0.00048828125, %v169_v53 }
 0x136   :  { %255 = vst [vmem:[#allocation6 + $0x38] sm:$0xff] %v239_v50  ;;  %263 = vst [vmem:[#allocation6 + $0x78] sm:$0xff] %v247_v51 }
 0x137   :  { %253 = vst [vmem:[#allocation6 + $0x28] sm:$0xff] %v237_v54  ;;  %261 = vst [vmem:[#allocation6 + $0x68] sm:$0xff] %v245_v55 }
 0x138   :  { %382 = shalt.err (!%p379_p12)
}
 0x139   :  { %s383_s24 = scalar_lea.hbm %s442_s1, 2048 }
 0x13a   :  { %p384_p13 = scmp.ne.s32.totalorder %s442_s1, %s383_s24  ;;  %p387_p0 = scmp.lt.u32.totalorder %s383_s24, %s442_s1 }
 0x13c   :  { %p389_p1 = pnand %p387_p0, %p384_p13 }
 0x13e   :  { %392 = shalt.err (!%p389_p1)
}
 0x13f   :  { %275 = dma.vmem_to_hbm [thread:$0]  %s270_s20, 2048, %s442_s1, [#allocation5], %s398_s16, %s398_s16, %s399_s17  }
 0x140   :  { %395 = dma.done.wait [#allocation5], 2048  }
 0x141   :  { %396 = vsyncadd [#allocation5], 4294965248 }
 0x142   :  { %279 = vsyncpa [#allocation4], 1 }
 0x143   :  { %280 = vsyncpa [#allocation5], 1 }

</bundles_post_ra>
